<compile_context>
chip_gen: v7x
topology: tpu7x:2x2x1
jax: 0.10.0
libtpu: 0.0.40
codegen_flags: <defaults>
</compile_context>

<pallas_src>
import jax
import jax.numpy as jnp
from jax import lax
from jax.experimental import pallas as pl
from jax.experimental.pallas import tpu as pltpu

_EPS = 1e-6


def _vmem_capacity_bytes():
    """Physical VMEM per core, with a conservative (v7x-sized) fallback."""
    try:
        info = pltpu.get_tpu_info()
        for name in ("vmem_capacity_bytes", "vmem_bytes", "vmem_size_bytes"):
            v = getattr(info, name, None)
            if v:
                return int(v)
    except Exception:
        pass
    return 64 * 1024 * 1024


def _pick_geometry(C, H, W, block_rows):
    """Channel/row blocking and the scoped-VMEM limit, chip aware."""
    # Fold all channels into the block when C is small (typical patch: C == 3).
    CB = C if C <= 8 else 1
    n_cb = pl.cdiv(C, CB)                       # exact: CB == C or CB == 1

    vmem_cap = _vmem_capacity_bytes()
    if vmem_cap >= 100 * 1024 * 1024:           # v5e / v6e: 128 MiB physical VMEM
        target_block_bytes = 6 * 1024 * 1024
        vmem_limit = 64 * 1024 * 1024
    else:                                       # v7x: 64 MiB physical VMEM
        target_block_bytes = 3 * 1024 * 1024
        vmem_limit = 32 * 1024 * 1024

    if block_rows is not None:
        TH = max(1, min(int(block_rows), H))
        if TH < H:                              # (8,128) rule for partial blocks
            TH = max(8, (TH // 8) * 8)
    else:
        # Budget based on the f32 working copy (4 B/elem) of one block.
        row_bytes = CB * W * 4
        max_rows = max(8, (target_block_bytes // max(row_bytes, 1)) // 8 * 8)
        TH = H if H <= max_rows else max_rows
    n_hb = pl.cdiv(H, TH)
    return CB, n_cb, TH, n_hb, vmem_limit


def _make_tv_kernel(numel, H, W, CB, TH, n_hb, use_lane_roll):
    rem = H - (n_hb - 1) * TH                   # valid rows in the last row block

    def kernel(x_ref, o_ref, acc_ref, carry_ref):
        cb = pl.program_id(0)
        hb = pl.program_id(1)
        first = jnp.logical_and(cb == 0, hb == 0)
        last = jnp.logical_and(cb == pl.num_programs(0) - 1,
                               hb == pl.num_programs(1) - 1)

        @pl.when(first)
        def _init():
            acc_ref[...] = jnp.zeros_like(acc_ref)
            o_ref[...] = jnp.zeros_like(o_ref)

        if use_lane_roll:
            lane = lax.broadcasted_iota(jnp.int32, (1, W), 1)

        def accumulate(x, valid_rows=None):
            """Add one (TH, W) slab's horizontal+vertical column sums into acc_ref.

            valid_rows: static count of valid leading rows; None means all rows are
            valid and no masking code is emitted.  Masks use selects, so garbage
            rows in the padded tail block (possibly NaN/Inf) cannot leak in.
            """
            nrows = x.shape[0]
            masked = valid_rows is not None and valid_rows < nrows
            if valid_rows is None:
                valid_rows = nrows

            # --- vertical |x[h+1, w] - x[h, w] + eps| for in-block row pairs ---
            v_cols = None
            if nrows > 1 and valid_rows > 1:
                d_h = jnp.abs(x[1:, :] - x[:-1, :] + _EPS)            # (nrows-1, W)
                if masked:
                    pv = (lax.broadcasted_iota(jnp.int32, (nrows - 1, W), 0)
                          < (valid_rows - 1))
                    d_h = jnp.where(pv, d_h, 0.0)
                v_cols = jnp.sum(d_h, axis=0, keepdims=True)          # (1, W)

            # --- horizontal |x[h, w+1] - x[h, w] + eps| ---
            if W > 1 and use_lane_roll:
                x_r = pltpu.roll(x, shift=W - 1, axis=1)   # x_r[:, w] = x[:, (w+1)%W]
                d_w = jnp.abs(x_r - x + _EPS)                         # (nrows, W)
                if masked:
                    rv = (lax.broadcasted_iota(jnp.int32, (nrows, W), 0)
                          < valid_rows)
                    d_w = jnp.where(rv, d_w, 0.0)
                h_cols = jnp.sum(d_w, axis=0, keepdims=True)          # (1, W)
                h_cols = jnp.where(lane < W - 1, h_cols, 0.0)         # drop wrapped col
                acc_ref[...] += h_cols if v_cols is None else h_cols + v_cols
                return
            if W > 1:
                # W not lane-native: sliced form (proven lowering).
                # TODO(synk): for large non-128-multiple W, padding W in the wrapper
                # and using the roll path would avoid the per-block lane-shift relayout.
                d_w = jnp.abs(x[:, 1:] - x[:, :-1] + _EPS)            # (nrows, W-1)
                if masked:
                    rv = (lax.broadcasted_iota(jnp.int32, (nrows, W - 1), 0)
                          < valid_rows)
                    d_w = jnp.where(rv, d_w, 0.0)
                h_cols = jnp.sum(d_w, axis=0, keepdims=True)          # (1, W-1)
                acc_ref[:, :W - 1] += h_cols
            if v_cols is not None:
                acc_ref[...] += v_cols

        for ci in range(CB):
            x = x_ref[ci].astype(jnp.float32)                         # (TH, W), f32 accum
            if n_hb == 1:
                accumulate(x)                                         # TH == H, mask-free
            else:
                if rem == TH:
                    accumulate(x)                                     # all blocks full
                else:
                    @pl.when(hb < n_hb - 1)
                    def _full_block(x=x):
                        accumulate(x)                                 # mask-free fast path

                    @pl.when(hb == n_hb - 1)
                    def _tail_block(x=x):
                        accumulate(x, rem)                            # masked tail only

                # vertical pair straddling the row-block boundary: rows (h0-1, h0)
                @pl.when(hb > 0)
                def _boundary(x=x, ci=ci):
                    acc_ref[...] += jnp.abs(x[0:1, :] - carry_ref[ci:ci + 1, :] + _EPS)

                # carry this block's last row for the next row block of this channel
                carry_ref[ci:ci + 1, :] = x[TH - 1:TH, :]

        @pl.when(last)
        def _finalize():
            o_ref[...] = (jnp.sum(acc_ref[...], axis=1, keepdims=True)
                          / jnp.float32(numel))

    return kernel


def total_variation(adv_patch, *, block_rows=None):
    """Pallas-TPU equivalent of TotalVariation.forward(adv_patch). Returns a scalar.

    Accepts float32 or bfloat16 patches of shape (C, H, W); accumulation is f32.
    """
    C, H, W = adv_patch.shape
    CB, n_cb, TH, n_hb, vmem_limit = _pick_geometry(C, H, W, block_rows)
    use_lane_roll = (W % 128 == 0) and W >= 128
    numel = C * H * W

    kernel = _make_tv_kernel(numel, H, W, CB, TH, n_hb, use_lane_roll)

    out = pl.pallas_call(
        kernel,
        out_shape=jax.ShapeDtypeStruct((1, 1), jnp.float32),
        grid_spec=pltpu.PrefetchScalarGridSpec(
            num_scalar_prefetch=0,
            grid=(n_cb, n_hb),
            in_specs=[pl.BlockSpec((CB, TH, W), lambda cb, hb: (cb, hb, 0))],
            out_specs=pl.BlockSpec((1, 1), lambda cb, hb: (0, 0)),
            scratch_shapes=[pltpu.VMEM((1, W), jnp.float32),    # lane-wide accumulator
                            pltpu.VMEM((CB, W), jnp.float32)],  # carried boundary rows
        ),
        compiler_params=pltpu.CompilerParams(
            # Both axes carry state (lane accumulator + boundary-row carry),
            # so they must run sequentially.
            dimension_semantics=("arbitrary", "arbitrary"),
            vmem_limit_bytes=vmem_limit,
        ),
    )(adv_patch)
    return out[0, 0]


if __name__ == "__main__":
    def reference_tv(x):
        x = x.astype(jnp.float32)
        tv1 = jnp.sum(jnp.abs(x[:, :, 1:] - x[:, :, :-1] + 1e-6))
        tv2 = jnp.sum(jnp.abs(x[:, 1:, :] - x[:, :-1, :] + 1e-6))
        return (tv1 + tv2) / x.size

    key = jax.random.PRNGKey(0)
    k1, k2, k3, k4, k5, k6 = jax.random.split(key, 6)

    # (1) lane-dense patch (W multiple of 128): roll fast path, channels folded,
    #     single grid step, no masks.
    p1 = jax.random.uniform(k1, (3, 16, 128), dtype=jnp.float32)
    t1 = total_variation(p1)
    jax.block_until_ready(t1)
    assert jnp.allclose(t1, reference_tv(p1), rtol=5e-5, atol=1e-6), (t1, reference_tv(p1))

    # (2) narrow patch tiled over rows (8-row blocks, padded tail, carried rows):
    #     sliced lane fallback, grid (1, 3), masked tail block only.
    p2 = jax.random.uniform(k2, (2, 20, 16), dtype=jnp.float32)
    t2 = total_variation(p2, block_rows=8)
    jax.block_until_ready(t2)
    assert jnp.allclose(t2, reference_tv(p2), rtol=5e-5, atol=1e-6), (t2, reference_tv(p2))

    # (3) lane-dense + row-tiled with exact division: mask-free full blocks + carry.
    p3 = jax.random.uniform(k3, (3, 24, 128), dtype=jnp.float32)
    t3 = total_variation(p3, block_rows=8)
    jax.block_until_ready(t3)
    assert jnp.allclose(t3, reference_tv(p3), rtol=5e-5, atol=1e-6), (t3, reference_tv(p3))

    # (4) lane-dense + row-tiled with a partial tail block (masked roll-path tail).
    p4 = jax.random.uniform(k4, (2, 19, 128), dtype=jnp.float32)
    t4 = total_variation(p4, block_rows=8)
    jax.block_until_ready(t4)
    assert jnp.allclose(t4, reference_tv(p4), rtol=5e-5, atol=1e-6), (t4, reference_tv(p4))

    # (5) tiny-H, non-8-aligned single block per channel.
    p5 = jax.random.uniform(k5, (2, 5, 16), dtype=jnp.float32)
    t5 = total_variation(p5)
    jax.block_until_ready(t5)
    assert jnp.allclose(t5, reference_tv(p5), rtol=5e-5, atol=1e-6), (t5, reference_tv(p5))

    # (6) bf16 input (cast to f32 in-kernel).
    p6 = jax.random.uniform(k6, (3, 16, 128), dtype=jnp.float32).astype(jnp.bfloat16)
    t6 = total_variation(p6)
    jax.block_until_ready(t6)
    assert jnp.allclose(t6, reference_tv(p6), rtol=1e-4, atol=1e-6), (t6, reference_tv(p6))

    print("KERNEL_OK")
</pallas_src>

<mosaic_0001>
module attributes {stable_mosaic.version = 11 : i64} {
  func.func @kernel(%arg0: i32, %arg1: i32, %arg2: memref<3x16x128xf32, #tpu.memory_space<vmem>>, %arg3: memref<1x1xf32, #tpu.memory_space<vmem>>, %arg4: memref<1x128xf32, #tpu.memory_space<vmem>>, %arg5: memref<3x128xf32, #tpu.memory_space<vmem>>) attributes {dimension_semantics = [#tpu.dimension_semantics<arbitrary>, #tpu.dimension_semantics<arbitrary>], iteration_bounds = array<i64: 1, 1>, scalar_prefetch = 0 : i64, scratch_operands = 2 : i64, tpu.core_type = #tpu.core_type<tc>, window_params = [{transform_indices = @transform_0, window_bounds = array<i64: 3, 16, 128>}, {pipeline_mode = #tpu.pipeline_mode<synchronous>, transform_indices = @transform_1, window_bounds = array<i64: 1, 1>}]} {
    %c0_i32 = arith.constant 0 : i32
    %0 = arith.cmpi eq, %arg0, %c0_i32 : i32
    %c0_i32_0 = arith.constant 0 : i32
    %1 = arith.cmpi eq, %arg1, %c0_i32_0 : i32
    %2 = arith.andi %0, %1 : i1
    %c0_i32_1 = arith.constant 0 : i32
    %3 = arith.cmpi eq, %arg0, %c0_i32_1 : i32
    %c0_i32_2 = arith.constant 0 : i32
    %4 = arith.cmpi eq, %arg1, %c0_i32_2 : i32
    %5 = arith.andi %3, %4 : i1
    %6 = arith.extui %2 : i1 to i32
    %c0_i32_3 = arith.constant 0 : i32
    %7 = arith.cmpi ne, %6, %c0_i32_3 : i32
    scf.if %7 {
      %cst_42 = arith.constant 0.000000e+00 : f32
      %86 = vector.broadcast %cst_42 : f32 to vector<1x128xf32>
      %c0_43 = arith.constant 0 : index
      %c0_44 = arith.constant 0 : index
      %87 = vector.load %arg4[%c0_43, %c0_44] : memref<1x128xf32, #tpu.memory_space<vmem>>, vector<1x128xf32>
      tpu.vector_store %arg4[%c0_43, %c0_44], %86 {strides = array<i32>} : memref<1x128xf32, #tpu.memory_space<vmem>>, vector<1x128xf32>,
      %cst_45 = arith.constant 0.000000e+00 : f32
      %88 = vector.broadcast %cst_45 : f32 to vector<1x1xf32>
      %c0_46 = arith.constant 0 : index
      %c0_47 = arith.constant 0 : index
      %89 = vector.load %arg3[%c0_46, %c0_47] : memref<1x1xf32, #tpu.memory_space<vmem>>, vector<1x1xf32>
      tpu.vector_store %arg3[%c0_46, %c0_47], %88 {strides = array<i32>} : memref<1x1xf32, #tpu.memory_space<vmem>>, vector<1x1xf32>,
    } else {
    }
    %8 = tpu.iota {dimensions = array<i32: 1>} : vector<1x128xi32>
    %c0 = arith.constant 0 : index
    %c0_4 = arith.constant 0 : index
    %c0_5 = arith.constant 0 : index
    %9 = vector.load %arg2[%c0, %c0_4, %c0_5] : memref<3x16x128xf32, #tpu.memory_space<vmem>>, vector<1x16x128xf32>
    %10 = vector.shape_cast %9 : vector<1x16x128xf32> to vector<16x128xf32>
    %11 = vector.extract_strided_slice %10 {offsets = [1, 0], sizes = [15, 128], strides = [1, 1]} : vector<16x128xf32> to vector<15x128xf32>
    %12 = vector.extract_strided_slice %10 {offsets = [0, 0], sizes = [15, 128], strides = [1, 1]} : vector<16x128xf32> to vector<15x128xf32>
    %13 = arith.subf %11, %12 : vector<15x128xf32>
    %cst = arith.constant 9.99999997E-7 : f32
    %14 = vector.broadcast %cst : f32 to vector<15x128xf32>
    %15 = arith.addf %13, %14 : vector<15x128xf32>
    %16 = math.absf %15 : vector<15x128xf32>
    %cst_6 = arith.constant dense<0.000000e+00> : vector<128xf32>
    %17 = vector.multi_reduction <add>, %16, %cst_6 [0] : vector<15x128xf32> to vector<128xf32>
    %18 = vector.shape_cast %17 : vector<128xf32> to vector<1x128xf32>
    %c127_i32 = arith.constant 127 : i32
    %19 = tpu.dynamic_rotate %10 by %c127_i32 dim 1 : vector<16x128xf32>, i32 -> vector<16x128xf32>
    %20 = arith.subf %19, %10 : vector<16x128xf32>
    %cst_7 = arith.constant 9.99999997E-7 : f32
    %21 = vector.broadcast %cst_7 : f32 to vector<16x128xf32>
    %22 = arith.addf %20, %21 : vector<16x128xf32>
    %23 = math.absf %22 : vector<16x128xf32>
    %cst_8 = arith.constant dense<0.000000e+00> : vector<128xf32>
    %24 = vector.multi_reduction <add>, %23, %cst_8 [0] : vector<16x128xf32> to vector<128xf32>
    %25 = vector.shape_cast %24 : vector<128xf32> to vector<1x128xf32>
    %c127_i32_9 = arith.constant 127 : i32
    %26 = vector.broadcast %c127_i32_9 : i32 to vector<1x128xi32>
    %27 = arith.cmpi slt, %8, %26 : vector<1x128xi32>
    %cst_10 = arith.constant 0.000000e+00 : f32
    %28 = vector.broadcast %cst_10 : f32 to vector<1x128xf32>
    %29 = arith.select %27, %25, %28 : vector<1x128xi1>, vector<1x128xf32>
    %c0_11 = arith.constant 0 : index
    %c0_12 = arith.constant 0 : index
    %30 = vector.load %arg4[%c0_11, %c0_12] : memref<1x128xf32, #tpu.memory_space<vmem>>, vector<1x128xf32>
    %31 = arith.addf %29, %18 : vector<1x128xf32>
    %32 = arith.addf %30, %31 : vector<1x128xf32>
    %c0_13 = arith.constant 0 : index
    %c0_14 = arith.constant 0 : index
    %33 = vector.load %arg4[%c0_13, %c0_14] : memref<1x128xf32, #tpu.memory_space<vmem>>, vector<1x128xf32>
    tpu.vector_store %arg4[%c0_13, %c0_14], %32 {strides = array<i32>} : memref<1x128xf32, #tpu.memory_space<vmem>>, vector<1x128xf32>,
    %c1 = arith.constant 1 : index
    %c0_15 = arith.constant 0 : index
    %c0_16 = arith.constant 0 : index
    %34 = vector.load %arg2[%c1, %c0_15, %c0_16] : memref<3x16x128xf32, #tpu.memory_space<vmem>>, vector<1x16x128xf32>
    %35 = vector.shape_cast %34 : vector<1x16x128xf32> to vector<16x128xf32>
    %36 = vector.extract_strided_slice %35 {offsets = [1, 0], sizes = [15, 128], strides = [1, 1]} : vector<16x128xf32> to vector<15x128xf32>
    %37 = vector.extract_strided_slice %35 {offsets = [0, 0], sizes = [15, 128], strides = [1, 1]} : vector<16x128xf32> to vector<15x128xf32>
    %38 = arith.subf %36, %37 : vector<15x128xf32>
    %cst_17 = arith.constant 9.99999997E-7 : f32
    %39 = vector.broadcast %cst_17 : f32 to vector<15x128xf32>
    %40 = arith.addf %38, %39 : vector<15x128xf32>
    %41 = math.absf %40 : vector<15x128xf32>
    %cst_18 = arith.constant dense<0.000000e+00> : vector<128xf32>
    %42 = vector.multi_reduction <add>, %41, %cst_18 [0] : vector<15x128xf32> to vector<128xf32>
    %43 = vector.shape_cast %42 : vector<128xf32> to vector<1x128xf32>
    %c127_i32_19 = arith.constant 127 : i32
    %44 = tpu.dynamic_rotate %35 by %c127_i32_19 dim 1 : vector<16x128xf32>, i32 -> vector<16x128xf32>
    %45 = arith.subf %44, %35 : vector<16x128xf32>
    %cst_20 = arith.constant 9.99999997E-7 : f32
    %46 = vector.broadcast %cst_20 : f32 to vector<16x128xf32>
    %47 = arith.addf %45, %46 : vector<16x128xf32>
    %48 = math.absf %47 : vector<16x128xf32>
    %cst_21 = arith.constant dense<0.000000e+00> : vector<128xf32>
    %49 = vector.multi_reduction <add>, %48, %cst_21 [0] : vector<16x128xf32> to vector<128xf32>
    %50 = vector.shape_cast %49 : vector<128xf32> to vector<1x128xf32>
    %c127_i32_22 = arith.constant 127 : i32
    %51 = vector.broadcast %c127_i32_22 : i32 to vector<1x128xi32>
    %52 = arith.cmpi slt, %8, %51 : vector<1x128xi32>
    %cst_23 = arith.constant 0.000000e+00 : f32
    %53 = vector.broadcast %cst_23 : f32 to vector<1x128xf32>
    %54 = arith.select %52, %50, %53 : vector<1x128xi1>, vector<1x128xf32>
    %c0_24 = arith.constant 0 : index
    %c0_25 = arith.constant 0 : index
    %55 = vector.load %arg4[%c0_24, %c0_25] : memref<1x128xf32, #tpu.memory_space<vmem>>, vector<1x128xf32>
    %56 = arith.addf %54, %43 : vector<1x128xf32>
    %57 = arith.addf %55, %56 : vector<1x128xf32>
    %c0_26 = arith.constant 0 : index
    %c0_27 = arith.constant 0 : index
    %58 = vector.load %arg4[%c0_26, %c0_27] : memref<1x128xf32, #tpu.memory_space<vmem>>, vector<1x128xf32>
    tpu.vector_store %arg4[%c0_26, %c0_27], %57 {strides = array<i32>} : memref<1x128xf32, #tpu.memory_space<vmem>>, vector<1x128xf32>,
    %c2 = arith.constant 2 : index
    %c0_28 = arith.constant 0 : index
    %c0_29 = arith.constant 0 : index
    %59 = vector.load %arg2[%c2, %c0_28, %c0_29] : memref<3x16x128xf32, #tpu.memory_space<vmem>>, vector<1x16x128xf32>
    %60 = vector.shape_cast %59 : vector<1x16x128xf32> to vector<16x128xf32>
    %61 = vector.extract_strided_slice %60 {offsets = [1, 0], sizes = [15, 128], strides = [1, 1]} : vector<16x128xf32> to vector<15x128xf32>
    %62 = vector.extract_strided_slice %60 {offsets = [0, 0], sizes = [15, 128], strides = [1, 1]} : vector<16x128xf32> to vector<15x128xf32>
    %63 = arith.subf %61, %62 : vector<15x128xf32>
    %cst_30 = arith.constant 9.99999997E-7 : f32
    %64 = vector.broadcast %cst_30 : f32 to vector<15x128xf32>
    %65 = arith.addf %63, %64 : vector<15x128xf32>
    %66 = math.absf %65 : vector<15x128xf32>
    %cst_31 = arith.constant dense<0.000000e+00> : vector<128xf32>
    %67 = vector.multi_reduction <add>, %66, %cst_31 [0] : vector<15x128xf32> to vector<128xf32>
    %68 = vector.shape_cast %67 : vector<128xf32> to vector<1x128xf32>
    %c127_i32_32 = arith.constant 127 : i32
    %69 = tpu.dynamic_rotate %60 by %c127_i32_32 dim 1 : vector<16x128xf32>, i32 -> vector<16x128xf32>
    %70 = arith.subf %69, %60 : vector<16x128xf32>
    %cst_33 = arith.constant 9.99999997E-7 : f32
    %71 = vector.broadcast %cst_33 : f32 to vector<16x128xf32>
    %72 = arith.addf %70, %71 : vector<16x128xf32>
    %73 = math.absf %72 : vector<16x128xf32>
    %cst_34 = arith.constant dense<0.000000e+00> : vector<128xf32>
    %74 = vector.multi_reduction <add>, %73, %cst_34 [0] : vector<16x128xf32> to vector<128xf32>
    %75 = vector.shape_cast %74 : vector<128xf32> to vector<1x128xf32>
    %c127_i32_35 = arith.constant 127 : i32
    %76 = vector.broadcast %c127_i32_35 : i32 to vector<1x128xi32>
    %77 = arith.cmpi slt, %8, %76 : vector<1x128xi32>
    %cst_36 = arith.constant 0.000000e+00 : f32
    %78 = vector.broadcast %cst_36 : f32 to vector<1x128xf32>
    %79 = arith.select %77, %75, %78 : vector<1x128xi1>, vector<1x128xf32>
    %c0_37 = arith.constant 0 : index
    %c0_38 = arith.constant 0 : index
    %80 = vector.load %arg4[%c0_37, %c0_38] : memref<1x128xf32, #tpu.memory_space<vmem>>, vector<1x128xf32>
    %81 = arith.addf %79, %68 : vector<1x128xf32>
    %82 = arith.addf %80, %81 : vector<1x128xf32>
    %c0_39 = arith.constant 0 : index
    %c0_40 = arith.constant 0 : index
    %83 = vector.load %arg4[%c0_39, %c0_40] : memref<1x128xf32, #tpu.memory_space<vmem>>, vector<1x128xf32>
    tpu.vector_store %arg4[%c0_39, %c0_40], %82 {strides = array<i32>} : memref<1x128xf32, #tpu.memory_space<vmem>>, vector<1x128xf32>,
    %84 = arith.extui %5 : i1 to i32
    %c0_i32_41 = arith.constant 0 : i32
    %85 = arith.cmpi ne, %84, %c0_i32_41 : i32
    scf.if %85 {
      %c0_42 = arith.constant 0 : index
      %c0_43 = arith.constant 0 : index
      %86 = vector.load %arg4[%c0_42, %c0_43] : memref<1x128xf32, #tpu.memory_space<vmem>>, vector<1x128xf32>
      %cst_44 = arith.constant dense<0.000000e+00> : vector<1xf32>
      %87 = vector.multi_reduction <add>, %86, %cst_44 [1] : vector<1x128xf32> to vector<1xf32>
      %88 = vector.shape_cast %87 : vector<1xf32> to vector<1x1xf32>
      %cst_45 = arith.constant 6.144000e+03 : f32
      %89 = vector.broadcast %cst_45 : f32 to vector<1x1xf32>
      %90 = arith.divf %88, %89 : vector<1x1xf32>
      %c0_46 = arith.constant 0 : index
      %c0_47 = arith.constant 0 : index
      %91 = vector.load %arg3[%c0_46, %c0_47] : memref<1x1xf32, #tpu.memory_space<vmem>>, vector<1x1xf32>
      tpu.vector_store %arg3[%c0_46, %c0_47], %90 {strides = array<i32>} : memref<1x1xf32, #tpu.memory_space<vmem>>, vector<1x1xf32>,
    } else {
    }
    return
  }
  func.func @transform_0(%arg0: i32, %arg1: i32) -> (i32, i32, i32) {
    %c0_i32 = arith.constant 0 : i32
    %c0_i32_0 = arith.constant 0 : i32
    return %arg0, %arg1, %c0_i32 : i32, i32, i32
  }
  func.func @transform_1(%arg0: i32, %arg1: i32) -> (i32, i32) {
    %c0_i32 = arith.constant 0 : i32
    %c0_i32_0 = arith.constant 0 : i32
    %c0_i32_1 = arith.constant 0 : i32
    return %c0_i32, %c0_i32_0 : i32, i32
  }
}

</mosaic_0001>

<bundles_post_ra>
// kernel: tpu_custom_call.1
= control target key start
LH: loop header
LB: loop body
LE: loop exit
PB: predicated region body
PF: predicated region fallthrough
CT: control target
= control target key end

     0   :  { %6 = vsyncpa [#allocation5], 0  ;;  %s341_s0 = inlined_call_operand.hbm [shape: f32[3,16,128], index: 0, kind: input, shape index: {}]   ;;  %s342_s1 = inlined_call_operand.hbm [shape: f32[1,1], index: 1, kind: output, shape index: {}]  }
   0x1   :  { %7 = vsyncpa [#allocation6], 0  ;;  %s274_s6 = smov [#allocation4]   ;;  %s226_s10 = scalar_lea.hbm %s341_s0, 768 }
   0x2   :  { %s13_s7 = sshll.u32 %s274_s6, 4  ;;  %p227_p0 = scmp.ne.s32.totalorder %s341_s0, %s226_s10  ;;  %s14_s7 = int_to_ptr.vmem [resolvable:$true] %s13_s7 }
   0x3   :  { %p230_p1 = scmp.lt.u32.totalorder %s226_s10, %s341_s0 }
   0x5   :  { %p232_p2 = pnand %p230_p1, %p227_p0 }
   0x7   :  { %235 = shalt.err (!%p232_p2)
}
   0x8   :  { %s236_s15 = scalar_lea.vmem %s14_s7, 768  ;;  %p241_p4 = scmp.lt.s32.totalorder %s14_s7, %s14_s7 }
   0x9   :  { %p237_p3 = scmp.ne.s32.totalorder %s14_s7, %s236_s15  ;;  %p242_p5 = scmp.lt.s32.totalorder %s236_s15, %s236_s15 }
   0xb   :  { %p243_p6 = por %p242_p5, %p241_p4 }
   0xd   :  { %p244_p7 = pnand %p243_p6, %p237_p3 }
   0xf   :  { %247 = shalt.err (!%p244_p7)
}
  0x10   :  { %s275_s16 = smov 128   ;;  %s276_s17 = smov 8  }
  0x11   :  { %19 = dma.hbm_to_vmem [thread:$0]  %s341_s0, 768, %s14_s7, [#allocation5], %s275_s16, %s275_s16, %s276_s17  }
  0x12   :  { %270 = dma.done.wait [#allocation5], 768  }
  0x13   :  { %271 = vsyncadd [#allocation5], 4294966528  ;;  %v90_v0 = vld [vmem:[#allocation4 + $0x10] sm:$0xff]  ;;  %v34_v1 = vld [vmem:[#allocation4] sm:$0xff]  ;;  %s277_s20 = smov 127   ;;  %v278_v6 = vmov 0.0  }
  0x14   :  { %120 = vrot.lane.b32.xlu1 %v90_v0, %s277_s20  ;;  %66 = vrot.lane.b32.xlu0 %v34_v1, %s277_s20  ;;  %v91_v2 = vld [vmem:[#allocation4 + $0x18] sm:$0xff]  ;;  %v35_v3 = vld [vmem:[#allocation4 + $0x8] sm:$0xff]  ;;  %v304_v5 = vld [vmem:[#allocation4 + $0x20] sm:$0xff]  ;;  %29 = vst [vmem:[#allocation2] sm:$0x1] %v278_v6  ;;  %v39_v7 = vrot.slane %v34_v1, 7 }
  0x15   :  { %v302_v4 = vld [vmem:[#allocation4 + $0x28] sm:$0xff]  ;;  %v40_v8 = vrot.slane %v35_v3, 7  ;;  %vm38_vm0 = vcmask 1040384   ;;  %v94_v12 = vrot.slane %v90_v0, 7  ;;  %v95_v13 = vrot.slane %v91_v2, 7  ;;  %s279_s0 = smov [#allocation7]  }
  0x16   :  { %v44_v10 = vsub.f32 %v34_v1, %v39_v7  ;;  %v148_v22 = vrot.slane %v302_v4, 7  ;;  %v147_v23 = vrot.slane %v304_v5, 7  ;;  %vm52_vm1 = vcmask 1046528   ;;  %s211_s21 = sshll.u32 %s279_s0, 4  ;;  %s212_s21 = int_to_ptr.vmem [resolvable:$true] %s211_s21 }
  0x17   :  { %v41_v9 = vsel %vm38_vm0, %v39_v7, %v40_v8  ;;  %v96_v16 = vsel %vm38_vm0, %v94_v12, %v95_v13  ;;  %v99_v19 = vsub.f32 %v90_v0, %v94_v12  ;;  %vm30_vm3 = vcmask 0   ;;  %s248_s22 = scalar_lea.vmem %s212_s21, 16  ;;  %s252_s23 = scalar_lea.vmem %s212_s21, 32 }
  0x18   :  { %122 = vrot.lane.b32.xlu1 %v91_v2, %s277_s20  ;;  %68 = vrot.lane.b32.xlu0 %v35_v3, %s277_s20  ;;  %v45_v11 = vsub.f32 %v35_v3, %v41_v9  ;;  %v46_v14 = vadd.f32 1e-06, %v44_v10  ;;  %v100_v20 = vsub.f32 %v91_v2, %v96_v16  ;;  %v149_v29 = vsel %vm38_vm0, %v147_v23, %v148_v22  ;;  %p249_p8 = scmp.ne.s32.totalorder %s212_s21, %s248_s22  ;;  %p253_p9 = scmp.lt.s32.totalorder %s212_s21, %s212_s21 }
  0x19   :  { %v101_v25 = vadd.f32 1e-06, %v99_v19  ;;  %v152_v32 = vsub.f32 %v304_v5, %v147_v23  ;;  %v153_v34 = vsub.f32 %v302_v4, %v149_v29  ;;  %31 = vst.msk [vmem:[#allocation7] sm:$0x1] %vm30_vm3, %v278_v6  ;;  %p254_p10 = scmp.lt.s32.totalorder %s252_s23, %s248_s22 }
  0x1a   :  { %v47_v15 = vadd.f32 1e-06, %v45_v11  ;;  %v48_v17 = vand.u32 2147483647, %v46_v14  ;;  %v102_v26 = vadd.f32 1e-06, %v100_v20 }
  0x1b   :  { %v103_v30 = vand.u32 2147483647, %v101_v25  ;;  %v154_v41 = vadd.f32 1e-06, %v152_v32  ;;  %v155_v43 = vadd.f32 1e-06, %v153_v34  ;;  %p255_p11 = por %p254_p10, %p253_p9 }
  0x1c   :  { %175 = vrot.lane.b32.xlu1 %v302_v4, %s277_s20  ;;  %173 = vrot.lane.b32.xlu0 %v304_v5, %s277_s20  ;;  %v49_v18 = vand.u32 2147483647, %v47_v15  ;;  %v53_v21 = vrot.slane %v48_v17, 1  ;;  %v104_v31 = vand.u32 2147483647, %v102_v26  ;;  %v32_v17 = vlaneseq }
  0x1d   :  { %v107_v37 = vrot.slane %v103_v30, 1  ;;  %v156_v52 = vand.u32 2147483647, %v154_v41  ;;  %v157_v54 = vand.u32 2147483647, %v155_v43  ;;  %p256_p12 = pnand %p255_p11, %p249_p8 }
  0x1e   :  { %v54_v24 = vrot.slane %v49_v18, 1  ;;  %v108_v40 = vrot.slane %v104_v31, 1  ;;  %v33_v25 = vand.u32 127, %v32_v17 }
  0x1f   :  { %v161_v7 = vrot.slane %v157_v54, 1 }
  0x20   :  { %v55_v27 = vsel %vm52_vm1, %v53_v21, %v54_v24  ;;  %v58_v28 = vsel %vm52_vm1, %v54_v24, 0.0  ;;  %v109_v50 = vsel %vm52_vm1, %v107_v37, %v108_v40  ;;  %v112_v51 = vsel %vm52_vm1, %v108_v40, 0.0  ;;  %v85_v40 = vld [vmem:[#allocation2] sm:$0x1] }
  0x21   :  { %v59_v33 = vadd.f32 %v58_v28, %v55_v27  ;;  %v113_v61 = vadd.f32 %v112_v51, %v109_v50  ;;  %vm83_vm2 = vcmp.lt.s32.totalorder %v33_v25, 127 }
  0x23   :  { %v60_v42 = vrot.slane %v59_v33, 4  ;;  %v114_v12 = vrot.slane %v113_v61, 4 }
  0x25   :  { %v61_v53 = vadd.f32 %v60_v42, %v59_v33  ;;  %v115_v22 = vadd.f32 %v114_v12, %v113_v61 }
  0x27   :  { %v116_v30 = vrot.slane %v115_v22, 2 }
  0x29   :  { %v117_v37 = vadd.f32 %v116_v30, %v115_v22 }
  0x86   :  { %v121_v35 = vpop.permute.xlu1 %120  ;;  %v67_v36 = vpop.permute.xlu0 %66 }
  0x87   :  { %v124_v38 = vsub.f32 %v121_v35, %v90_v0  ;;  %v70_v39 = vsub.f32 %v67_v36, %v34_v1 }
  0x89   :  { %v126_v44 = vadd.f32 1e-06, %v124_v38  ;;  %v72_v45 = vadd.f32 1e-06, %v70_v39 }
  0x8a   :  { %v123_v46 = vpop.permute.xlu1 %122  ;;  %v69_v47 = vpop.permute.xlu0 %68 }
  0x8b   :  { %v125_v48 = vsub.f32 %v123_v46, %v91_v2  ;;  %v71_v49 = vsub.f32 %v69_v47, %v35_v3  ;;  %v128_v55 = vand.u32 2147483647, %v126_v44  ;;  %v74_v58 = vand.u32 2147483647, %v72_v45 }
  0x8c   :  { %v160_v2 = vrot.slane %v156_v52, 1  ;;  %v62_v3 = vrot.slane %v61_v53, 2  ;;  %v118_v45 = vrot.slane %v117_v37, 1 }
  0x8d   :  { %v127_v56 = vadd.f32 1e-06, %v125_v48  ;;  %v73_v57 = vadd.f32 1e-06, %v71_v49 }
  0x8e   :  { %v176_v59 = vpop.permute.xlu1 %175  ;;  %v174_v60 = vpop.permute.xlu0 %173  ;;  %v63_v18 = vadd.f32 %v62_v3, %v61_v53  ;;  %v162_v19 = vsel %vm52_vm1, %v160_v2, %v161_v7  ;;  %v119_v49 = vadd.f32 %v118_v45, %v117_v37 }
  0x8f   :  { %v129_v62 = vand.u32 2147483647, %v127_v56  ;;  %v75_v63 = vand.u32 2147483647, %v73_v57  ;;  %v178_v0 = vsub.f32 %v176_v59, %v302_v4  ;;  %v177_v1 = vsub.f32 %v174_v60, %v304_v5 }
  0x90   :  { %v165_v5 = vsel %vm52_vm1, %v161_v7, 0.0  ;;  %v64_v26 = vrot.slane %v63_v18, 1 }
  0x91   :  { %v130_v8 = vadd.f32 %v129_v62, %v128_v55  ;;  %v76_v9 = vadd.f32 %v75_v63, %v74_v58  ;;  %v180_v10 = vadd.f32 1e-06, %v178_v0  ;;  %v179_v11 = vadd.f32 1e-06, %v177_v1 }
  0x92   :  { %v166_v27 = vadd.f32 %v165_v5, %v162_v19  ;;  %v65_v33 = vadd.f32 %v64_v26, %v63_v18 }
  0x93   :  { %v131_v13 = vrot.slane %v130_v8, 4  ;;  %v77_v14 = vrot.slane %v76_v9, 4  ;;  %v182_v15 = vand.u32 2147483647, %v180_v10  ;;  %v181_v16 = vand.u32 2147483647, %v179_v11 }
  0x94   :  { %v167_v34 = vrot.slane %v166_v27, 4 }
  0x95   :  { %v132_v20 = vadd.f32 %v131_v13, %v130_v8  ;;  %v78_v4 = vadd.f32 %v77_v14, %v76_v9  ;;  %v183_v21 = vadd.f32 %v182_v15, %v181_v16 }
  0x96   :  { %v168_v42 = vadd.f32 %v167_v34, %v166_v27 }
  0x97   :  { %v133_v23 = vrot.slane %v132_v20, 2  ;;  %v79_v24 = vrot.slane %v78_v4, 2  ;;  %v184_v29 = vrot.slane %v183_v21, 4 }
  0x98   :  { %v169_v47 = vrot.slane %v168_v42, 2 }
  0x99   :  { %v80_v28 = vadd.f32 %v79_v24, %v78_v4  ;;  %v134_v31 = vadd.f32 %v133_v23, %v132_v20  ;;  %v185_v36 = vadd.f32 %v184_v29, %v183_v21 }
  0x9a   :  { %v170_v51 = vadd.f32 %v169_v47, %v168_v42 }
  0x9b   :  { %v81_v32 = vrot.slane %v80_v28, 1  ;;  %v135_v38 = vrot.slane %v134_v31, 1  ;;  %v186_v43 = vrot.slane %v185_v36, 2 }
  0x9c   :  { %v171_v56 = vrot.slane %v170_v51, 1 }
  0x9d   :  { %v82_v35 = vadd.f32 %v81_v32, %v80_v28  ;;  %v136_v46 = vadd.f32 %v135_v38, %v134_v31  ;;  %v187_v48 = vadd.f32 %v186_v43, %v185_v36 }
  0x9e   :  { %v172_v58 = vadd.f32 %v171_v56, %v170_v51 }
  0x9f   :  { %v84_v39 = vsel %vm83_vm2, %v82_v35, 0.0  ;;  %v137_v50 = vsel %vm83_vm2, %v136_v46, 0.0  ;;  %v188_v52 = vrot.slane %v187_v48, 1 }
  0xa0   :  { %v86_v41 = vadd.f32 %v84_v39, %v65_v33  ;;  %v139_v53 = vadd.f32 %v137_v50, %v119_v49 }
  0xa1   :  { %v189_v57 = vadd.f32 %v188_v52, %v187_v48 }
  0xa2   :  { %v87_v44 = vadd.f32 %v86_v41, %v85_v40 }
  0xa3   :  { %v190_v59 = vsel %vm83_vm2, %v189_v57, 0.0 }
  0xa4   :  { %88 = vst [vmem:[#allocation2] sm:$0x1] %v87_v44  ;;  %v192_v60 = vadd.f32 %v190_v59, %v172_v58 }
  0xab   :  { %v138_v54 = vld [vmem:[#allocation2] sm:$0x1] }
  0xac   :  { %v140_v55 = vadd.f32 %v139_v53, %v138_v54 }
  0xae   :  { %141 = vst [vmem:[#allocation2] sm:$0x1] %v140_v55 }
  0xb5   :  { %v191_v61 = vld [vmem:[#allocation2] sm:$0x1] }
  0xb6   :  { %v193_v62 = vadd.f32 %v192_v60, %v191_v61 }
  0xb8   :  { %194 = vst [vmem:[#allocation2] sm:$0x1] %v193_v62 }
  0xbf   :  { %v197_v63 = vld [vmem:[#allocation2] sm:$0x1] }
  0xc0   :  { %v198_v0 = vsel %vm38_vm0, %v197_v63, 0.0 }
  0xc1   :  { %199 = vadd.xlane.f32.xlu0 %v198_v0 }
 0x14e   :  { %v200_v1 = vpop.xlane.xlu0 %199 }
 0x14f   :  { %v202_v2 = vmul.f32 0.00016276042, %v200_v1 }
 0x151   :  { %204 = vst.msk [vmem:[#allocation7] sm:$0x1] %vm30_vm3, %v202_v2 }
 0x152   :  { %259 = shalt.err (!%p256_p12)
}
 0x153   :  { %s260_s26 = scalar_lea.hbm %s342_s1, 16 }
 0x154   :  { %p261_p13 = scmp.ne.s32.totalorder %s342_s1, %s260_s26  ;;  %p264_p0 = scmp.lt.u32.totalorder %s260_s26, %s342_s1 }
 0x156   :  { %p266_p1 = pnand %p264_p0, %p261_p13 }
 0x158   :  { %269 = shalt.err (!%p266_p1)
}
 0x159   :  { %214 = dma.vmem_to_hbm [thread:$0]  %s212_s21, 16, %s342_s1, [#allocation6]  }
 0x15a   :  { %272 = dma.done.wait [#allocation6], 16  }
 0x15b   :  { %273 = vsyncadd [#allocation6], 4294967280 }
 0x15c   :  { %218 = vsyncpa [#allocation5], 1 }
 0x15d   :  { %219 = vsyncpa [#allocation6], 1 }

</bundles_post_ra>
